<compile_context>
chip_gen: v7x
topology: tpu7x:2x2x1
jax: 0.10.0
libtpu: 0.0.40
codegen_flags: <defaults>
</compile_context>

<pallas_src>
import functools

import jax
import jax.numpy as jnp
from jax import lax
from jax.experimental import pallas as pl
from jax.experimental.pallas import tpu as pltpu


# ----------------------------------------------------------------------------
# Pallas kernels
# ----------------------------------------------------------------------------
def conv_stats_kernel(p_ref, w_ref, o_ref, sum_ref, sq_ref, acc_ref):
    """Conv-as-matmul tile (K-tiled) + fused per-channel sum / sum-of-squares.

    Grid = (j: Cout tiles [parallel], i: row tiles [arbitrary],
            k: K tiles [arbitrary, innermost reduction]).
    p_ref: (tm, tk)   w_ref: (tk, tn)
    o_ref: (tm, tn)   sum_ref / sq_ref: (1, tn) resident accumulators
    acc_ref: (tm, tn) f32 VMEM scratch (K-reduction accumulator).
    """
    k_id = pl.program_id(2)

    @pl.when(k_id == 0)
    def _():
        acc_ref[...] = jnp.zeros_like(acc_ref)

    @pl.when(jnp.logical_and(pl.program_id(1) == 0, k_id == 0))
    def _():
        sum_ref[...] = jnp.zeros_like(sum_ref)
        sq_ref[...] = jnp.zeros_like(sq_ref)

    acc_ref[...] += jnp.dot(p_ref[...], w_ref[...],
                            preferred_element_type=jnp.float32)

    @pl.when(k_id == pl.num_programs(2) - 1)
    def _():
        acc = acc_ref[...]                      # f32, already in vregs
        o_ref[...] = acc.astype(o_ref.dtype)
        sum_ref[...] += jnp.sum(acc, axis=0, keepdims=True)
        sq_ref[...] += jnp.sum(acc * acc, axis=0, keepdims=True)


def scale_shift_relu_kernel(y_ref, scale_ref, shift_ref, o_ref):
    """Streaming y*scale + shift, ReLU (scale/shift precomputed per channel)."""
    y = y_ref[...].astype(jnp.float32)
    o_ref[...] = jnp.maximum(y * scale_ref[...] + shift_ref[...], 0.0)


# ----------------------------------------------------------------------------
# Glue helpers
# ----------------------------------------------------------------------------
def _round_up(v, m):
    return (v + m - 1) // m * m


@functools.lru_cache(maxsize=None)
def _vmem_limit_bytes():
    """Generation-aware scoped-VMEM budget (75% of reported capacity)."""
    cap = 64 * 1024 * 1024  # conservative fallback (v7x per-core VMEM)
    try:
        info = pltpu.get_tpu_info()
        reported = int(getattr(info, "vmem_capacity_bytes", 0) or 0)
        if reported > 0:
            cap = reported
    except Exception:
        pass
    return max(32 * 1024 * 1024, min(cap * 3 // 4, 96 * 1024 * 1024))


def _pick_tile(total, prefer):
    """Largest multiple of 128 that divides `total` (a multiple of 128) and is
    <= prefer, floored at 128."""
    t = max(128, (min(total, prefer) // 128) * 128)
    while total % t:
        t -= 128
    return t


def _choose_tm2(m, cout_pad, y_esize, vmem_limit, min_tm):
    """Row tile for the streaming scale/shift+ReLU pass (no K operand)."""
    budget = int(vmem_limit * 0.7)
    tm2 = min(2048, pl.next_power_of_2(max(_round_up(m, min_tm), min_tm)))

    def need(t):
        return 2 * t * cout_pad * y_esize + 2 * t * cout_pad * 4 + 64 * cout_pad

    while tm2 > min_tm and need(tm2) > budget:
        tm2 //= 2
    return tm2


def _choose_tiles_k1(k_pad, cout_pad, esize, out_esize, vmem_limit, min_tm,
                     tm_cap):
    """(tm, tk, tn) for the conv matmul + stats kernel, sized against VMEM.

    Prefers keeping the row tile >= 256; shrinks the K tile, then the Cout
    tile, before collapsing the row tile further.
    """
    budget = int(vmem_limit * 0.7)
    tn = _pick_tile(cout_pad, 512)
    tk = _pick_tile(k_pad, 2048)
    tm = min(1024, tm_cap)

    def need(tm_, tk_, tn_):
        return (2 * tm_ * tk_ * esize        # patch tiles (double buffered)
                + 2 * tk_ * tn_ * esize      # weight tiles
                + 2 * tm_ * tn_ * out_esize  # conv-out tiles
                + tm_ * tn_ * 4              # f32 accumulator scratch
                + 64 * tn_)                  # stats accumulators + slack

    while need(tm, tk, tn) > budget and tm > 256:
        tm //= 2
    while need(tm, tk, tn) > budget and tk > 128:
        tk = _pick_tile(k_pad, max(128, tk // 2))
    while need(tm, tk, tn) > budget and tn > 128:
        tn = _pick_tile(cout_pad, max(128, tn // 2))
    while need(tm, tk, tn) > budget and tm > min_tm:
        tm //= 2
    return tm, tk, tn


def _im2col_nhwc(x_nchw, kh, kw, stride, padding):
    """Patch matrix (N*OH*OW, KH*KW*Cin) built so the final reshape is
    contiguous (no large materialized transpose); only x itself is transposed
    NCHW->NHWC (4x smaller than the patch matrix)."""
    n, c, h, w = x_nchw.shape
    x_nhwc = jnp.transpose(x_nchw, (0, 2, 3, 1))
    xp = jnp.pad(x_nhwc, ((0, 0), (padding, padding), (padding, padding), (0, 0)))
    oh = (h + 2 * padding - kh) // stride + 1
    ow = (w + 2 * padding - kw) // stride + 1
    patches = []
    for i in range(kh):
        for j in range(kw):
            patches.append(
                xp[:, i:i + stride * oh:stride, j:j + stride * ow:stride, :])
    p = jnp.stack(patches, axis=3)                    # (N, OH, OW, KH*KW, C)
    return p.reshape(n * oh * ow, kh * kw * c), oh, ow


# ----------------------------------------------------------------------------
# Forward wrapper
# ----------------------------------------------------------------------------
@functools.partial(jax.jit,
                   static_argnames=("stride", "padding", "eps", "matmul_dtype"))
def encode_block_forward(x, weight, bias, gamma, beta, *, stride=2, padding=1,
                         eps=1e-5, matmul_dtype=jnp.bfloat16):
    """x: (N, Cin, H, W).  weight: (Cout, Cin, KH, KW) OIHW.  Returns NCHW f32.

    `bias` is accepted for API parity but intentionally NOT added: a
    per-channel constant before training-mode BatchNorm cancels exactly.
    matmul_dtype controls the matmul operands AND the stored conv-out
    intermediate (bf16 default halves HBM traffic; accumulation/stats/BN math
    stay f32).  Use matmul_dtype=jnp.float32 for strict-accuracy checks.
    """
    del bias  # cancels under training-mode BatchNorm (see docstring)

    n, cin, h, w = x.shape
    cout, _, kh, kw = weight.shape

    patches, oh, ow = _im2col_nhwc(x, kh, kw, stride, padding)   # (M, K)
    m, k = patches.shape

    esize = jnp.dtype(matmul_dtype).itemsize
    min_tm = 16 if esize <= 2 else 8          # bf16 (16,128) sublane packing
    vmem_limit = _vmem_limit_bytes()

    # Lane-dense padding: contraction dim and output channels -> multiples of 128.
    k_pad = _round_up(k, 128)
    cout_pad = _round_up(cout, 128)

    tm2 = _choose_tm2(m, cout_pad, esize, vmem_limit, min_tm)     # kernel 2
    tm, tk, tn = _choose_tiles_k1(k_pad, cout_pad, esize, esize,  # kernel 1
                                  vmem_limit, min_tm, tm2)
    m_pad = _round_up(m, tm2)   # tm | tm2 | m_pad (both powers of two)

    # Weight reordered to (KH, KW, Cin) contraction order to match im2col.
    w_flat = jnp.transpose(weight, (2, 3, 1, 0)).reshape(k, cout)
    w_p = jnp.pad(w_flat, ((0, k_pad - k), (0, cout_pad - cout)))
    patches_p = jnp.pad(patches, ((0, m_pad - m), (0, k_pad - k)))

    # --- Kernel 1: conv matmul (K/Cout/row tiled) + fused batch statistics ---
    grid1 = (cout_pad // tn, m_pad // tm, k_pad // tk)
    conv_out, ch_sum, ch_sq = pl.pallas_call(
        conv_stats_kernel,
        out_shape=(jax.ShapeDtypeStruct((m_pad, cout_pad), matmul_dtype),
                   jax.ShapeDtypeStruct((1, cout_pad), jnp.float32),
                   jax.ShapeDtypeStruct((1, cout_pad), jnp.float32)),
        grid_spec=pltpu.PrefetchScalarGridSpec(
            num_scalar_prefetch=0,
            grid=grid1,
            in_specs=[
                pl.BlockSpec((tm, tk), lambda j, i, kk: (i, kk)),
                pl.BlockSpec((tk, tn), lambda j, i, kk: (kk, j)),
            ],
            out_specs=(pl.BlockSpec((tm, tn), lambda j, i, kk: (i, j)),
                       pl.BlockSpec((1, tn), lambda j, i, kk: (0, j)),
                       pl.BlockSpec((1, tn), lambda j, i, kk: (0, j))),
            scratch_shapes=[pltpu.VMEM((tm, tn), jnp.float32)]),
        compiler_params=pltpu.CompilerParams(
            dimension_semantics=("parallel", "arbitrary", "arbitrary"),
            vmem_limit_bytes=vmem_limit),
    )(patches_p.astype(matmul_dtype), w_p.astype(matmul_dtype))

    # --- Tiny XLA op: per-channel scale/shift from the fused batch stats -----
    inv_n = 1.0 / float(m)
    mean = ch_sum * inv_n
    var = jnp.maximum(ch_sq * inv_n - mean * mean, 0.0)  # biased, clamped
    g_p = jnp.pad(gamma.astype(jnp.float32).reshape(1, cout),
                  ((0, 0), (0, cout_pad - cout)))
    be_p = jnp.pad(beta.astype(jnp.float32).reshape(1, cout),
                   ((0, 0), (0, cout_pad - cout)))
    scale = g_p * lax.rsqrt(var + eps)
    shift = be_p - mean * scale

    # --- Kernel 2: streaming scale/shift + ReLU (larger row tile) -----------
    bn_out = pl.pallas_call(
        scale_shift_relu_kernel,
        out_shape=jax.ShapeDtypeStruct((m_pad, cout_pad), jnp.float32),
        grid_spec=pltpu.PrefetchScalarGridSpec(
            num_scalar_prefetch=0,
            grid=(m_pad // tm2,),
            in_specs=[
                pl.BlockSpec((tm2, cout_pad), lambda i: (i, 0)),
                pl.BlockSpec((1, cout_pad), lambda i: (0, 0)),
                pl.BlockSpec((1, cout_pad), lambda i: (0, 0)),
            ],
            out_specs=pl.BlockSpec((tm2, cout_pad), lambda i: (i, 0)),
        ),
        compiler_params=pltpu.CompilerParams(
            dimension_semantics=("parallel",),
            vmem_limit_bytes=vmem_limit),
    )(conv_out, scale, shift)

    # Glue: slice off padding, (M, Cout) -> (N, OH, OW, Cout) -> NCHW.
    out = bn_out[:m, :cout].reshape(n, oh, ow, cout).transpose(0, 3, 1, 2)
    return out


# ----------------------------------------------------------------------------
# Pure-JAX reference (matches PyTorch: conv(+bias) -> training-mode BN -> ReLU)
# ----------------------------------------------------------------------------
def reference_forward(x, weight, bias, gamma, beta, stride, padding, eps):
    y = lax.conv_general_dilated(
        x, weight, (stride, stride),
        ((padding, padding), (padding, padding)),
        dimension_numbers=("NCHW", "OIHW", "NCHW"))
    y = y + bias[None, :, None, None]
    mean = y.mean(axis=(0, 2, 3), keepdims=True)
    var = y.var(axis=(0, 2, 3), keepdims=True)   # biased, like BN training mode
    yn = (y - mean) / jnp.sqrt(var + eps)
    y = gamma[None, :, None, None] * yn + beta[None, :, None, None]
    return jnp.maximum(y, 0.0)


# ----------------------------------------------------------------------------
if __name__ == "__main__":
    # EncodeBlock(in_ch=4, out_ch=8, kernel_size=4, stride=2, padding=1,
    #             bias=True, norm='batch', act='relu')
    in_ch, out_ch, ksize, stride, padding = 4, 8, 4, 2, 1
    N, H, W = 2, 16, 16

    key = jax.random.PRNGKey(0)
    kx, kw, kb, kg, kbe = jax.random.split(key, 5)
    x = jax.random.normal(kx, (N, in_ch, H, W), dtype=jnp.float32)
    weight = 0.1 * jax.random.normal(kw, (out_ch, in_ch, ksize, ksize),
                                     dtype=jnp.float32)
    bias = 0.05 * jax.random.normal(kb, (out_ch,), dtype=jnp.float32)
    gamma = 1.0 + 0.1 * jax.random.normal(kg, (out_ch,), dtype=jnp.float32)
    beta = 0.1 * jax.random.normal(kbe, (out_ch,), dtype=jnp.float32)

    ref = reference_forward(x, weight, bias, gamma, beta, stride, padding, 1e-5)

    # Strict correctness check in f32.
    out = encode_block_forward(x, weight, bias, gamma, beta,
                               stride=stride, padding=padding, eps=1e-5,
                               matmul_dtype=jnp.float32)
    out = jax.block_until_ready(out)
    assert out.shape == (N, out_ch, H // stride, W // stride), out.shape
    assert jnp.allclose(out, ref, atol=1e-4, rtol=1e-4), \
        float(jnp.max(jnp.abs(out - ref)))

    # Default (bf16 operands + bf16 intermediate) fast path: loose tolerance.
    out_bf16 = encode_block_forward(x, weight, bias, gamma, beta,
                                    stride=stride, padding=padding, eps=1e-5)
    out_bf16 = jax.block_until_ready(out_bf16)
    assert out_bf16.shape == out.shape, out_bf16.shape
    assert bool(jnp.all(jnp.isfinite(out_bf16)))
    assert jnp.allclose(out_bf16, ref, atol=1e-1, rtol=1e-1), \
        float(jnp.max(jnp.abs(out_bf16 - ref)))

    print("KERNEL_OK")
</pallas_src>

<mosaic_0001>
module attributes {stable_mosaic.version = 11 : i64} {
  func.func @scale_shift_relu_kernel(%arg0: i32, %arg1: memref<128x128xf32, #tpu.memory_space<vmem>>, %arg2: memref<1x128xf32, #tpu.memory_space<vmem>>, %arg3: memref<1x128xf32, #tpu.memory_space<vmem>>, %arg4: memref<128x128xf32, #tpu.memory_space<vmem>>) attributes {dimension_semantics = [#tpu.dimension_semantics<parallel>], iteration_bounds = array<i64: 1>, scalar_prefetch = 0 : i64, scratch_operands = 0 : i64, tpu.core_type = #tpu.core_type<tc>, window_params = [{transform_indices = @transform_0, window_bounds = array<i64: 128, 128>}, {pipeline_mode = #tpu.pipeline_mode<synchronous>, transform_indices = @transform_1, window_bounds = array<i64: 1, 128>}, {pipeline_mode = #tpu.pipeline_mode<synchronous>, transform_indices = @transform_2, window_bounds = array<i64: 1, 128>}, {transform_indices = @transform_3, window_bounds = array<i64: 128, 128>}]} {
    %c0 = arith.constant 0 : index
    %c0_0 = arith.constant 0 : index
    %0 = vector.load %arg1[%c0, %c0_0] : memref<128x128xf32, #tpu.memory_space<vmem>>, vector<128x128xf32>
    %c0_1 = arith.constant 0 : index
    %c0_2 = arith.constant 0 : index
    %1 = vector.load %arg2[%c0_1, %c0_2] : memref<1x128xf32, #tpu.memory_space<vmem>>, vector<1x128xf32>
    %2 = vector.broadcast %1 : vector<1x128xf32> to vector<128x128xf32>
    %3 = arith.mulf %0, %2 : vector<128x128xf32>
    %c0_3 = arith.constant 0 : index
    %c0_4 = arith.constant 0 : index
    %4 = vector.load %arg3[%c0_3, %c0_4] : memref<1x128xf32, #tpu.memory_space<vmem>>, vector<1x128xf32>
    %5 = vector.broadcast %4 : vector<1x128xf32> to vector<128x128xf32>
    %6 = arith.addf %3, %5 : vector<128x128xf32>
    %cst = arith.constant 0.000000e+00 : f32
    %7 = vector.broadcast %cst : f32 to vector<128x128xf32>
    %8 = arith.maximumf %6, %7 : vector<128x128xf32>
    %c0_5 = arith.constant 0 : index
    %c0_6 = arith.constant 0 : index
    %9 = vector.load %arg4[%c0_5, %c0_6] : memref<128x128xf32, #tpu.memory_space<vmem>>, vector<128x128xf32>
    tpu.vector_store %arg4[%c0_5, %c0_6], %8 {strides = array<i32>} : memref<128x128xf32, #tpu.memory_space<vmem>>, vector<128x128xf32>,
    return
  }
  func.func @transform_0(%arg0: i32) -> (i32, i32) {
    %c0_i32 = arith.constant 0 : i32
    %c0_i32_0 = arith.constant 0 : i32
    return %arg0, %c0_i32 : i32, i32
  }
  func.func @transform_1(%arg0: i32) -> (i32, i32) {
    %c0_i32 = arith.constant 0 : i32
    %c0_i32_0 = arith.constant 0 : i32
    %c0_i32_1 = arith.constant 0 : i32
    return %c0_i32, %c0_i32_0 : i32, i32
  }
  func.func @transform_2(%arg0: i32) -> (i32, i32) {
    %c0_i32 = arith.constant 0 : i32
    %c0_i32_0 = arith.constant 0 : i32
    %c0_i32_1 = arith.constant 0 : i32
    return %c0_i32, %c0_i32_0 : i32, i32
  }
  func.func @transform_3(%arg0: i32) -> (i32, i32) {
    %c0_i32 = arith.constant 0 : i32
    %c0_i32_0 = arith.constant 0 : i32
    return %arg0, %c0_i32 : i32, i32
  }
}

module attributes {stable_mosaic.version = 11 : i64} {
  func.func @conv_stats_kernel(%arg0: i32, %arg1: i32, %arg2: i32, %arg3: memref<128x128xf32, #tpu.memory_space<vmem>>, %arg4: memref<128x128xf32, #tpu.memory_space<vmem>>, %arg5: memref<128x128xf32, #tpu.memory_space<vmem>>, %arg6: memref<1x128xf32, #tpu.memory_space<vmem>>, %arg7: memref<1x128xf32, #tpu.memory_space<vmem>>, %arg8: memref<128x128xf32, #tpu.memory_space<vmem>>) attributes {dimension_semantics = [#tpu.dimension_semantics<parallel>, #tpu.dimension_semantics<arbitrary>, #tpu.dimension_semantics<arbitrary>], iteration_bounds = array<i64: 1, 1, 1>, scalar_prefetch = 0 : i64, scratch_operands = 1 : i64, tpu.core_type = #tpu.core_type<tc>, window_params = [{transform_indices = @transform_0, window_bounds = array<i64: 128, 128>}, {transform_indices = @transform_1, window_bounds = array<i64: 128, 128>}, {transform_indices = @transform_2, window_bounds = array<i64: 128, 128>}, {transform_indices = @transform_3, window_bounds = array<i64: 1, 128>}, {transform_indices = @transform_4, window_bounds = array<i64: 1, 128>}]} {
    %c0_i32 = arith.constant 0 : i32
    %0 = arith.cmpi eq, %arg2, %c0_i32 : i32
    %1 = arith.extui %0 : i1 to i32
    %c0_i32_0 = arith.constant 0 : i32
    %2 = arith.cmpi ne, %1, %c0_i32_0 : i32
    scf.if %2 {
      %cst_13 = arith.constant 0.000000e+00 : f32
      %17 = vector.broadcast %cst_13 : f32 to vector<128x128xf32>
      %c0_14 = arith.constant 0 : index
      %c0_15 = arith.constant 0 : index
      %18 = vector.load %arg8[%c0_14, %c0_15] : memref<128x128xf32, #tpu.memory_space<vmem>>, vector<128x128xf32>
      tpu.vector_store %arg8[%c0_14, %c0_15], %17 {strides = array<i32>} : memref<128x128xf32, #tpu.memory_space<vmem>>, vector<128x128xf32>,
    } else {
    }
    %c0_i32_1 = arith.constant 0 : i32
    %3 = arith.cmpi eq, %arg1, %c0_i32_1 : i32
    %c0_i32_2 = arith.constant 0 : i32
    %4 = arith.cmpi eq, %arg2, %c0_i32_2 : i32
    %5 = arith.andi %3, %4 : i1
    %6 = arith.extui %5 : i1 to i32
    %c0_i32_3 = arith.constant 0 : i32
    %7 = arith.cmpi ne, %6, %c0_i32_3 : i32
    scf.if %7 {
      %cst_13 = arith.constant 0.000000e+00 : f32
      %17 = vector.broadcast %cst_13 : f32 to vector<1x128xf32>
      %c0_14 = arith.constant 0 : index
      %c0_15 = arith.constant 0 : index
      %18 = vector.load %arg6[%c0_14, %c0_15] : memref<1x128xf32, #tpu.memory_space<vmem>>, vector<1x128xf32>
      tpu.vector_store %arg6[%c0_14, %c0_15], %17 {strides = array<i32>} : memref<1x128xf32, #tpu.memory_space<vmem>>, vector<1x128xf32>,
      %cst_16 = arith.constant 0.000000e+00 : f32
      %19 = vector.broadcast %cst_16 : f32 to vector<1x128xf32>
      %c0_17 = arith.constant 0 : index
      %c0_18 = arith.constant 0 : index
      %20 = vector.load %arg7[%c0_17, %c0_18] : memref<1x128xf32, #tpu.memory_space<vmem>>, vector<1x128xf32>
      tpu.vector_store %arg7[%c0_17, %c0_18], %19 {strides = array<i32>} : memref<1x128xf32, #tpu.memory_space<vmem>>, vector<1x128xf32>,
    } else {
    }
    %c0 = arith.constant 0 : index
    %c0_4 = arith.constant 0 : index
    %8 = vector.load %arg8[%c0, %c0_4] : memref<128x128xf32, #tpu.memory_space<vmem>>, vector<128x128xf32>
    %c0_5 = arith.constant 0 : index
    %c0_6 = arith.constant 0 : index
    %9 = vector.load %arg3[%c0_5, %c0_6] : memref<128x128xf32, #tpu.memory_space<vmem>>, vector<128x128xf32>
    %c0_7 = arith.constant 0 : index
    %c0_8 = arith.constant 0 : index
    %10 = vector.load %arg4[%c0_7, %c0_8] : memref<128x128xf32, #tpu.memory_space<vmem>>, vector<128x128xf32>
    %cst = arith.constant dense<0.000000e+00> : vector<128x128xf32>
    %11 = tpu.matmul %9, %10, %cst {dimension_numbers = #tpu.dot_dimension_numbers<[1], [0], [0], [1], [0, 0, 1, 1], [], []>} : vector<128x128xf32>, vector<128x128xf32>, vector<128x128xf32> -> vector<128x128xf32>
    %12 = arith.addf %8, %11 : vector<128x128xf32>
    %c0_9 = arith.constant 0 : index
    %c0_10 = arith.constant 0 : index
    %13 = vector.load %arg8[%c0_9, %c0_10] : memref<128x128xf32, #tpu.memory_space<vmem>>, vector<128x128xf32>
    tpu.vector_store %arg8[%c0_9, %c0_10], %12 {strides = array<i32>} : memref<128x128xf32, #tpu.memory_space<vmem>>, vector<128x128xf32>,
    %c0_i32_11 = arith.constant 0 : i32
    %14 = arith.cmpi eq, %arg2, %c0_i32_11 : i32
    %15 = arith.extui %14 : i1 to i32
    %c0_i32_12 = arith.constant 0 : i32
    %16 = arith.cmpi ne, %15, %c0_i32_12 : i32
    scf.if %16 {
      %c0_13 = arith.constant 0 : index
      %c0_14 = arith.constant 0 : index
      %17 = vector.load %arg8[%c0_13, %c0_14] : memref<128x128xf32, #tpu.memory_space<vmem>>, vector<128x128xf32>
      %c0_15 = arith.constant 0 : index
      %c0_16 = arith.constant 0 : index
      %18 = vector.load %arg5[%c0_15, %c0_16] : memref<128x128xf32, #tpu.memory_space<vmem>>, vector<128x128xf32>
      tpu.vector_store %arg5[%c0_15, %c0_16], %17 {strides = array<i32>} : memref<128x128xf32, #tpu.memory_space<vmem>>, vector<128x128xf32>,
      %c0_17 = arith.constant 0 : index
      %c0_18 = arith.constant 0 : index
      %19 = vector.load %arg6[%c0_17, %c0_18] : memref<1x128xf32, #tpu.memory_space<vmem>>, vector<1x128xf32>
      %cst_19 = arith.constant dense<0.000000e+00> : vector<128xf32>
      %20 = vector.multi_reduction <add>, %17, %cst_19 [0] : vector<128x128xf32> to vector<128xf32>
      %21 = vector.shape_cast %20 : vector<128xf32> to vector<1x128xf32>
      %22 = arith.addf %19, %21 : vector<1x128xf32>
      %c0_20 = arith.constant 0 : index
      %c0_21 = arith.constant 0 : index
      %23 = vector.load %arg6[%c0_20, %c0_21] : memref<1x128xf32, #tpu.memory_space<vmem>>, vector<1x128xf32>
      tpu.vector_store %arg6[%c0_20, %c0_21], %22 {strides = array<i32>} : memref<1x128xf32, #tpu.memory_space<vmem>>, vector<1x128xf32>,
      %c0_22 = arith.constant 0 : index
      %c0_23 = arith.constant 0 : index
      %24 = vector.load %arg7[%c0_22, %c0_23] : memref<1x128xf32, #tpu.memory_space<vmem>>, vector<1x128xf32>
      %25 = arith.mulf %17, %17 : vector<128x128xf32>
      %cst_24 = arith.constant dense<0.000000e+00> : vector<128xf32>
      %26 = vector.multi_reduction <add>, %25, %cst_24 [0] : vector<128x128xf32> to vector<128xf32>
      %27 = vector.shape_cast %26 : vector<128xf32> to vector<1x128xf32>
      %28 = arith.addf %24, %27 : vector<1x128xf32>
      %c0_25 = arith.constant 0 : index
      %c0_26 = arith.constant 0 : index
      %29 = vector.load %arg7[%c0_25, %c0_26] : memref<1x128xf32, #tpu.memory_space<vmem>>, vector<1x128xf32>
      tpu.vector_store %arg7[%c0_25, %c0_26], %28 {strides = array<i32>} : memref<1x128xf32, #tpu.memory_space<vmem>>, vector<1x128xf32>,
    } else {
    }
    return
  }
  func.func @transform_0(%arg0: i32, %arg1: i32, %arg2: i32) -> (i32, i32) {
    %c0_i32 = arith.constant 0 : i32
    return %arg1, %arg2 : i32, i32
  }
  func.func @transform_1(%arg0: i32, %arg1: i32, %arg2: i32) -> (i32, i32) {
    %c0_i32 = arith.constant 0 : i32
    return %arg2, %arg0 : i32, i32
  }
  func.func @transform_2(%arg0: i32, %arg1: i32, %arg2: i32) -> (i32, i32) {
    %c0_i32 = arith.constant 0 : i32
    return %arg1, %arg0 : i32, i32
  }
  func.func @transform_3(%arg0: i32, %arg1: i32, %arg2: i32) -> (i32, i32) {
    %c0_i32 = arith.constant 0 : i32
    %c0_i32_0 = arith.constant 0 : i32
    return %c0_i32, %arg0 : i32, i32
  }
  func.func @transform_4(%arg0: i32, %arg1: i32, %arg2: i32) -> (i32, i32) {
    %c0_i32 = arith.constant 0 : i32
    %c0_i32_0 = arith.constant 0 : i32
    return %c0_i32, %arg0 : i32, i32
  }
}

</mosaic_0001>

<bundles_post_ra>
// kernel: encode_block_forward.3
= control target key start
LH: loop header
LB: loop body
LE: loop exit
PB: predicated region body
PF: predicated region fallthrough
CT: control target
= control target key end

     0   :  { %s254_s0 = inlined_call_operand.vmem [shape: f32[128,128], index: 0, kind: input, shape index: {}]   ;;  %s255_s1 = inlined_call_operand.vmem [shape: f32[1,128], index: 1, kind: input, shape index: {}]   ;;  %s256_s2 = inlined_call_operand.vmem [shape: f32[1,128], index: 2, kind: input, shape index: {}]   ;;  %s257_s3 = inlined_call_operand.vmem [shape: f32[128,128], index: 3, kind: output, shape index: {}]  }
   0x1   :  { %v14_v0 = vld [vmem:[%s254_s0] sm:$0xff]  ;;  %v15_v4 = vld [vmem:[%s254_s0 + $0x8] sm:$0xff]  ;;  %v16_v5 = vld [vmem:[%s254_s0 + $0x10] sm:$0xff] }
   0x2   :  { %v112_v1 = vld [vmem:[%s255_s1] ss:$0 sm:$0xff]  ;;  %v17_v6 = vld [vmem:[%s254_s0 + $0x18] sm:$0xff]  ;;  %v19_v11 = vld [vmem:[%s254_s0 + $0x28] sm:$0xff] }
   0x3   :  { %v143_v2 = vld [vmem:[%s256_s2] ss:$0 sm:$0xff]  ;;  %v37_v3 = vmul.f32 %v112_v1, %v14_v0  ;;  %v38_v7 = vmul.f32 %v112_v1, %v15_v4  ;;  %v39_v8 = vmul.f32 %v112_v1, %v16_v5  ;;  %v40_v9 = vmul.f32 %v112_v1, %v17_v6  ;;  %v20_v12 = vld [vmem:[%s254_s0 + $0x30] sm:$0xff]  ;;  %v21_v17 = vld [vmem:[%s254_s0 + $0x38] sm:$0xff] }
   0x4   :  { %v18_v10 = vld [vmem:[%s254_s0 + $0x20] sm:$0xff]  ;;  %v42_v15 = vmul.f32 %v112_v1, %v19_v11  ;;  %v43_v16 = vmul.f32 %v112_v1, %v20_v12  ;;  %v44_v21 = vmul.f32 %v112_v1, %v21_v17  ;;  %v23_v27 = vld [vmem:[%s254_s0 + $0x48] sm:$0xff]  ;;  %v24_v28 = vld [vmem:[%s254_s0 + $0x50] sm:$0xff] }
   0x5   :  { %v60_v13 = vadd.f32 %v143_v2, %v37_v3  ;;  %v41_v14 = vmul.f32 %v112_v1, %v18_v10  ;;  %v61_v18 = vadd.f32 %v143_v2, %v38_v7  ;;  %v62_v19 = vadd.f32 %v143_v2, %v39_v8  ;;  %v22_v22 = vld [vmem:[%s254_s0 + $0x40] sm:$0xff]  ;;  %v25_v29 = vld [vmem:[%s254_s0 + $0x58] sm:$0xff]  ;;  %v27_v35 = vld [vmem:[%s254_s0 + $0x68] sm:$0xff] }
   0x6   :  { %v63_v20 = vadd.f32 %v143_v2, %v40_v9  ;;  %v65_v25 = vadd.f32 %v143_v2, %v42_v15  ;;  %v66_v26 = vadd.f32 %v143_v2, %v43_v16  ;;  %v67_v33 = vadd.f32 %v143_v2, %v44_v21  ;;  %v26_v34 = vld [vmem:[%s254_s0 + $0x60] sm:$0xff]  ;;  %v28_v36 = vld [vmem:[%s254_s0 + $0x70] sm:$0xff]  ;;  %v29_v41 = vld [vmem:[%s254_s0 + $0x78] sm:$0xff] }
   0x7   :  { %v76_v23 = vmax.f32 %v60_v13, 0.0  ;;  %v64_v24 = vadd.f32 %v143_v2, %v41_v14  ;;  %v77_v30 = vmax.f32 %v61_v18, 0.0  ;;  %v78_v31 = vmax.f32 %v62_v19, 0.0 }
   0x8   :  { %v79_v32 = vmax.f32 %v63_v20, 0.0  ;;  %v81_v38 = vmax.f32 %v65_v25, 0.0  ;;  %v82_v39 = vmax.f32 %v66_v26, 0.0  ;;  %v45_v40 = vmul.f32 %v112_v1, %v22_v22 }
   0x9   :  { %92 = vst [vmem:[%s257_s3] sm:$0xff] %v76_v23  ;;  %v80_v37 = vmax.f32 %v64_v24, 0.0  ;;  %93 = vst [vmem:[%s257_s3 + $0x8] sm:$0xff] %v77_v30  ;;  %v83_v42 = vmax.f32 %v67_v33, 0.0  ;;  %v46_v43 = vmul.f32 %v112_v1, %v23_v27  ;;  %v47_v44 = vmul.f32 %v112_v1, %v24_v28 }
   0xa   :  { %94 = vst [vmem:[%s257_s3 + $0x10] sm:$0xff] %v78_v31  ;;  %95 = vst [vmem:[%s257_s3 + $0x18] sm:$0xff] %v79_v32  ;;  %v48_v45 = vmul.f32 %v112_v1, %v25_v29  ;;  %v68_v46 = vadd.f32 %v143_v2, %v45_v40  ;;  %v49_v47 = vmul.f32 %v112_v1, %v26_v34 }
   0xb   :  { %96 = vst [vmem:[%s257_s3 + $0x20] sm:$0xff] %v80_v37  ;;  %97 = vst [vmem:[%s257_s3 + $0x28] sm:$0xff] %v81_v38  ;;  %v50_v48 = vmul.f32 %v112_v1, %v27_v35  ;;  %v51_v49 = vmul.f32 %v112_v1, %v28_v36  ;;  %v69_v50 = vadd.f32 %v143_v2, %v46_v43 }
   0xc   :  { %98 = vst [vmem:[%s257_s3 + $0x30] sm:$0xff] %v82_v39  ;;  %99 = vst [vmem:[%s257_s3 + $0x38] sm:$0xff] %v83_v42  ;;  %v70_v51 = vadd.f32 %v143_v2, %v47_v44  ;;  %v71_v52 = vadd.f32 %v143_v2, %v48_v45  ;;  %v52_v53 = vmul.f32 %v112_v1, %v29_v41  ;;  %v84_v54 = vmax.f32 %v68_v46, 0.0 }
   0xd   :  { %v72_v55 = vadd.f32 %v143_v2, %v49_v47  ;;  %v73_v56 = vadd.f32 %v143_v2, %v50_v48  ;;  %v74_v57 = vadd.f32 %v143_v2, %v51_v49  ;;  %v85_v58 = vmax.f32 %v69_v50, 0.0 }
   0xe   :  { %v86_v59 = vmax.f32 %v70_v51, 0.0  ;;  %v87_v60 = vmax.f32 %v71_v52, 0.0  ;;  %v75_v61 = vadd.f32 %v143_v2, %v52_v53  ;;  %100 = vst [vmem:[%s257_s3 + $0x40] sm:$0xff] %v84_v54 }
   0xf   :  { %v88_v62 = vmax.f32 %v72_v55, 0.0  ;;  %v89_v63 = vmax.f32 %v73_v56, 0.0  ;;  %v90_v0 = vmax.f32 %v74_v57, 0.0  ;;  %101 = vst [vmem:[%s257_s3 + $0x48] sm:$0xff] %v85_v58 }
  0x10   :  { %102 = vst [vmem:[%s257_s3 + $0x50] sm:$0xff] %v86_v59  ;;  %103 = vst [vmem:[%s257_s3 + $0x58] sm:$0xff] %v87_v60  ;;  %v91_v1 = vmax.f32 %v75_v61, 0.0 }
  0x11   :  { %104 = vst [vmem:[%s257_s3 + $0x60] sm:$0xff] %v88_v62  ;;  %105 = vst [vmem:[%s257_s3 + $0x68] sm:$0xff] %v89_v63 }
  0x12   :  { %106 = vst [vmem:[%s257_s3 + $0x70] sm:$0xff] %v90_v0  ;;  %107 = vst [vmem:[%s257_s3 + $0x78] sm:$0xff] %v91_v1 }

// kernel: encode_block_forward.2
= control target key start
LH: loop header
LB: loop body
LE: loop exit
PB: predicated region body
PF: predicated region fallthrough
CT: control target
= control target key end

     0   :  { %v514_v40 = vmov 0.0   ;;  %s702_s1 = inlined_call_operand.vmem [shape: f32[128,128], index: 1, kind: input, shape index: {}]   ;;  %s703_s0 = inlined_call_operand.vmem [shape: f32[128,128], index: 0, kind: input, shape index: {}]   ;;  %s704_s3 = inlined_call_operand.vmem [shape: f32[1,128], index: 3, kind: output, shape index: {1}]   ;;  %s705_s4 = inlined_call_operand.vmem [shape: f32[1,128], index: 4, kind: output, shape index: {2}]   ;;  %s706_s2 = inlined_call_operand.vmem [shape: f32[128,128], index: 2, kind: output, shape index: {0}]  }
   0x1   :  { %v73_v0 = vld [vmem:[%s702_s1] sm:$0xff]  ;;  %v74_v1 = vld [vmem:[%s702_s1 + $0x8] sm:$0xff]  ;;  %v75_v2 = vld [vmem:[%s702_s1 + $0x10] sm:$0xff]  ;;  %39 = vst [vmem:[%s704_s3] sm:$0x1] %v514_v40 }
   0x2   :  { %v465_v3 = vpack.c.bf16 %v74_v1, %v73_v0  ;;  %v76_v4 = vld [vmem:[%s702_s1 + $0x18] sm:$0xff]  ;;  %v77_v6 = vld [vmem:[%s702_s1 + $0x20] sm:$0xff]  ;;  %v78_v7 = vld [vmem:[%s702_s1 + $0x28] sm:$0xff]  ;;  %40 = vst [vmem:[%s705_s4] sm:$0x1] %v514_v40 }
   0x3   :  { %v469_v5 = vpack.c.bf16 %v76_v4, %v75_v2  ;;  %v473_v8 = vpack.c.bf16 %v78_v7, %v77_v6  ;;  %v57_v9 = vld [vmem:[%s703_s0] sm:$0xff]  ;;  %v79_v10 = vld [vmem:[%s702_s1 + $0x30] sm:$0xff]  ;;  %v80_v11 = vld [vmem:[%s702_s1 + $0x38] sm:$0xff] }
   0x4   :  { %466 = vmatprep.subr.bf16.mxu0 %v465_v3  ;;  %497 = vmatprep.subr.bf16.mxu1 %v465_v3  ;;  %v65_v12 = vld [vmem:[%s703_s0 + $0x40] sm:$0xff]  ;;  %v477_v13 = vpack.c.bf16 %v80_v11, %v79_v10  ;;  %v82_v15 = vld [vmem:[%s702_s1 + $0x48] sm:$0xff]  ;;  %v83_v17 = vld [vmem:[%s702_s1 + $0x50] sm:$0xff] }
   0x5   :  { %468 = vmatpush3.bf16.msra.mxu0 %v465_v3  ;;  %505 = vmatpush3.bf16.msra.mxu1 %v465_v3  ;;  %v81_v14 = vld [vmem:[%s702_s1 + $0x40] sm:$0xff]  ;;  %v84_v18 = vld [vmem:[%s702_s1 + $0x58] sm:$0xff]  ;;  %v86_v21 = vld [vmem:[%s702_s1 + $0x68] sm:$0xff] }
   0x6   :  { %470 = vmatprep.subr.bf16.mxu0 %v469_v5  ;;  %498 = vmatprep.subr.bf16.mxu1 %v469_v5  ;;  %v481_v16 = vpack.c.bf16 %v82_v15, %v81_v14  ;;  %v485_v19 = vpack.c.bf16 %v84_v18, %v83_v17  ;;  %v85_v20 = vld [vmem:[%s702_s1 + $0x60] sm:$0xff]  ;;  %v87_v23 = vld [vmem:[%s702_s1 + $0x70] sm:$0xff]  ;;  %v88_v24 = vld [vmem:[%s702_s1 + $0x78] sm:$0xff] }
   0x7   :  { %441 = vmatprep.mubr.f32.mxu0 %v57_v9  ;;  %453 = vmatprep.mubr.f32.mxu1 %v65_v12  ;;  %v489_v22 = vpack.c.bf16 %v86_v21, %v85_v20  ;;  %v493_v25 = vpack.c.bf16 %v88_v24, %v87_v23  ;;  %v58_v26 = vld [vmem:[%s703_s0 + $0x8] sm:$0xff]  ;;  %v59_v28 = vld [vmem:[%s703_s0 + $0x10] sm:$0xff]  ;;  %v60_v30 = vld [vmem:[%s703_s0 + $0x18] sm:$0xff] }
   0x8   :  { %v66_v27 = vld [vmem:[%s703_s0 + $0x48] sm:$0xff]  ;;  %v67_v29 = vld [vmem:[%s703_s0 + $0x50] sm:$0xff]  ;;  %v68_v31 = vld [vmem:[%s703_s0 + $0x58] sm:$0xff] }
   0x9   :  { %472 = vmatpush3.bf16.msra.mxu0 %v469_v5  ;;  %506 = vmatpush3.bf16.msra.mxu1 %v469_v5  ;;  %v61_v32 = vld [vmem:[%s703_s0 + $0x20] sm:$0xff]  ;;  %v62_v34 = vld [vmem:[%s703_s0 + $0x28] sm:$0xff]  ;;  %v63_v36 = vld [vmem:[%s703_s0 + $0x30] sm:$0xff] }
   0xa   :  { %474 = vmatprep.subr.bf16.mxu0 %v473_v8  ;;  %499 = vmatprep.subr.bf16.mxu1 %v473_v8  ;;  %v69_v33 = vld [vmem:[%s703_s0 + $0x60] sm:$0xff]  ;;  %v70_v35 = vld [vmem:[%s703_s0 + $0x68] sm:$0xff]  ;;  %v71_v37 = vld [vmem:[%s703_s0 + $0x70] sm:$0xff] }
   0xb   :  { %v64_v38 = vld [vmem:[%s703_s0 + $0x38] sm:$0xff] }
   0xc   :  { %v72_v39 = vld [vmem:[%s703_s0 + $0x78] sm:$0xff] }
   0xd   :  { %476 = vmatpush3.bf16.msra.mxu0 %v473_v8  ;;  %507 = vmatpush3.bf16.msra.mxu1 %v473_v8 }
   0xe   :  { %478 = vmatprep.subr.bf16.mxu0 %v477_v13  ;;  %500 = vmatprep.subr.bf16.mxu1 %v477_v13 }
  0x11   :  { %480 = vmatpush3.bf16.msra.mxu0 %v477_v13  ;;  %508 = vmatpush3.bf16.msra.mxu1 %v477_v13 }
  0x12   :  { %482 = vmatprep.subr.bf16.mxu0 %v481_v16  ;;  %501 = vmatprep.subr.bf16.mxu1 %v481_v16 }
  0x15   :  { %484 = vmatpush3.bf16.msra.mxu0 %v481_v16  ;;  %509 = vmatpush3.bf16.msra.mxu1 %v481_v16 }
  0x16   :  { %486 = vmatprep.subr.bf16.mxu0 %v485_v19  ;;  %502 = vmatprep.subr.bf16.mxu1 %v485_v19 }
  0x19   :  { %488 = vmatpush3.bf16.msra.mxu0 %v485_v19  ;;  %510 = vmatpush3.bf16.msra.mxu1 %v485_v19 }
  0x1a   :  { %490 = vmatprep.subr.bf16.mxu0 %v489_v22  ;;  %503 = vmatprep.subr.bf16.mxu1 %v489_v22 }
  0x1d   :  { %492 = vmatpush3.bf16.msra.mxu0 %v489_v22  ;;  %511 = vmatpush3.bf16.msra.mxu1 %v489_v22 }
  0x1e   :  { %494 = vmatprep.subr.bf16.mxu0 %v493_v25  ;;  %504 = vmatprep.subr.bf16.mxu1 %v493_v25 }
  0x21   :  { %496 = vmatpush3.bf16.msra.mxu0 %v493_v25  ;;  %512 = vmatpush3.bf16.msra.mxu1 %v493_v25 }
  0x24   :  { %442 = vmatmul.mubr.f32.vlgmr.msra.gmra.mrb[0].mxu0 %v58_v26  ;;  %454 = vmatmul.mubr.f32.vlgmr.msra.gmra.mrb[0].mxu1 %v66_v27 }
  0x25   :  { %444 = vmatprep.mubr.f32.mxu0 %v59_v28  ;;  %456 = vmatprep.mubr.f32.mxu1 %v67_v29 }
  0x28   :  { %445 = vmatmul.mubr.f32.gmra.mrb[2].mxu0 %v60_v30  ;;  %457 = vmatmul.mubr.f32.gmra.mrb[2].mxu1 %v68_v31 }
  0x29   :  { %447 = vmatprep.mubr.f32.mxu0 %v61_v32  ;;  %459 = vmatprep.mubr.f32.mxu1 %v69_v33 }
  0x2c   :  { %448 = vmatmul.mubr.f32.gmra.mrb[4].mxu0 %v62_v34  ;;  %460 = vmatmul.mubr.f32.gmra.mrb[4].mxu1 %v70_v35 }
  0x2d   :  { %450 = vmatprep.mubr.f32.mxu0 %v63_v36  ;;  %462 = vmatprep.mubr.f32.mxu1 %v71_v37 }
  0x30   :  { %451 = vmatmul.mubr.f32.gmra.mrb[6].mxu0 %v64_v38  ;;  %463 = vmatmul.mubr.f32.gmra.mrb[6].mxu1 %v72_v39 }
  0xf7   :  { %v443_v41 = vpop.f32.mrb[0].mxu0  ;;  %v455_v42 = vpop.f32.mrb[0].mxu1 }
  0xf8   :  { %286 = vst [vmem:[%s706_s2 + $0x8] sm:$0xff] %v443_v41  ;;  %v327_v43 = vmul.f32 %v443_v41, %v443_v41  ;;  %v155_v44 = vpop.f32.mrb[1].mxu0  ;;  %294 = vst [vmem:[%s706_s2 + $0x48] sm:$0xff] %v455_v42  ;;  %v195_v45 = vpop.f32.mrb[1].mxu1  ;;  %v335_v17 = vmul.f32 %v455_v42, %v455_v42 }
  0xf9   :  { %285 = vst [vmem:[%s706_s2] sm:$0xff] %v155_v44  ;;  %v302_v46 = vadd.f32 %v443_v41, %v155_v44  ;;  %v326_v47 = vmul.f32 %v155_v44, %v155_v44  ;;  %293 = vst [vmem:[%s706_s2 + $0x40] sm:$0xff] %v195_v45  ;;  %v334_v14 = vmul.f32 %v195_v45, %v195_v45 }
  0xfb   :  { %v342_v48 = vadd.f32 %v327_v43, %v326_v47  ;;  %v446_v49 = vpop.f32.mrb[2].mxu0  ;;  %v458_v50 = vpop.f32.mrb[2].mxu1 }
  0xfc   :  { %288 = vst [vmem:[%s706_s2 + $0x18] sm:$0xff] %v446_v49  ;;  %v165_v51 = vpop.f32.mrb[3].mxu0  ;;  %296 = vst [vmem:[%s706_s2 + $0x58] sm:$0xff] %v458_v50  ;;  %v205_v52 = vpop.f32.mrb[3].mxu1  ;;  %v329_v55 = vmul.f32 %v446_v49, %v446_v49  ;;  %v337_v23 = vmul.f32 %v458_v50, %v458_v50 }
  0xfd   :  { %287 = vst [vmem:[%s706_s2 + $0x10] sm:$0xff] %v165_v51  ;;  %v303_v53 = vadd.f32 %v302_v46, %v165_v51  ;;  %v328_v54 = vmul.f32 %v165_v51, %v165_v51  ;;  %295 = vst [vmem:[%s706_s2 + $0x50] sm:$0xff] %v205_v52  ;;  %v336_v20 = vmul.f32 %v205_v52, %v205_v52  ;;  %v325_v51 = vld [vmem:[%s705_s4] sm:$0x1] }
  0xff   :  { %v343_v56 = vadd.f32 %v342_v48, %v328_v54  ;;  %v449_v57 = vpop.f32.mrb[4].mxu0  ;;  %v304_v58 = vadd.f32 %v446_v49, %v303_v53  ;;  %v461_v59 = vpop.f32.mrb[4].mxu1  ;;  %v301_v48 = vld [vmem:[%s704_s3] sm:$0x1] }
 0x100   :  { %290 = vst [vmem:[%s706_s2 + $0x28] sm:$0xff] %v449_v57  ;;  %v175_v60 = vpop.f32.mrb[5].mxu0  ;;  %298 = vst [vmem:[%s706_s2 + $0x68] sm:$0xff] %v461_v59  ;;  %v215_v61 = vpop.f32.mrb[5].mxu1  ;;  %v331_v1 = vmul.f32 %v449_v57, %v449_v57  ;;  %v339_v29 = vmul.f32 %v461_v59, %v461_v59 }
 0x101   :  { %289 = vst [vmem:[%s706_s2 + $0x20] sm:$0xff] %v175_v60  ;;  %v305_v62 = vadd.f32 %v304_v58, %v175_v60  ;;  %v330_v63 = vmul.f32 %v175_v60, %v175_v60  ;;  %v344_v0 = vadd.f32 %v343_v56, %v329_v55  ;;  %297 = vst [vmem:[%s706_s2 + $0x60] sm:$0xff] %v215_v61 }
 0x102   :  { %v338_v26 = vmul.f32 %v215_v61, %v215_v61 }
 0x103   :  { %v345_v2 = vadd.f32 %v344_v0, %v330_v63  ;;  %v452_v3 = vpop.f32.mrb[6].mxu0  ;;  %v306_v4 = vadd.f32 %v449_v57, %v305_v62  ;;  %v464_v5 = vpop.f32.mrb[6].mxu1 }
 0x104   :  { %292 = vst [vmem:[%s706_s2 + $0x38] sm:$0xff] %v452_v3  ;;  %v185_v6 = vpop.f32.mrb[7].mxu0  ;;  %300 = vst [vmem:[%s706_s2 + $0x78] sm:$0xff] %v464_v5  ;;  %v225_v7 = vpop.f32.mrb[7].mxu1  ;;  %v333_v11 = vmul.f32 %v452_v3, %v452_v3  ;;  %v341_v35 = vmul.f32 %v464_v5, %v464_v5 }
 0x105   :  { %291 = vst [vmem:[%s706_s2 + $0x30] sm:$0xff] %v185_v6  ;;  %v307_v8 = vadd.f32 %v306_v4, %v185_v6  ;;  %v332_v9 = vmul.f32 %v185_v6, %v185_v6  ;;  %v346_v10 = vadd.f32 %v345_v2, %v331_v1  ;;  %299 = vst [vmem:[%s706_s2 + $0x70] sm:$0xff] %v225_v7 }
 0x106   :  { %v340_v32 = vmul.f32 %v225_v7, %v225_v7 }
 0x107   :  { %v308_v12 = vadd.f32 %v452_v3, %v307_v8  ;;  %v347_v13 = vadd.f32 %v346_v10, %v332_v9 }
 0x109   :  { %v348_v15 = vadd.f32 %v347_v13, %v333_v11  ;;  %v309_v16 = vadd.f32 %v308_v12, %v195_v45 }
 0x10b   :  { %v349_v18 = vadd.f32 %v348_v15, %v334_v14  ;;  %v310_v19 = vadd.f32 %v455_v42, %v309_v16 }
 0x10d   :  { %v311_v21 = vadd.f32 %v310_v19, %v205_v52  ;;  %v350_v22 = vadd.f32 %v349_v18, %v335_v17 }
 0x10f   :  { %v351_v24 = vadd.f32 %v350_v22, %v336_v20  ;;  %v312_v25 = vadd.f32 %v458_v50, %v311_v21 }
 0x111   :  { %v313_v27 = vadd.f32 %v312_v25, %v215_v61  ;;  %v352_v28 = vadd.f32 %v351_v24, %v337_v23 }
 0x113   :  { %v353_v30 = vadd.f32 %v352_v28, %v338_v26  ;;  %v314_v31 = vadd.f32 %v461_v59, %v313_v27 }
 0x115   :  { %v315_v33 = vadd.f32 %v314_v31, %v225_v7  ;;  %v354_v34 = vadd.f32 %v353_v30, %v339_v29 }
 0x117   :  { %v316_v36 = vadd.f32 %v464_v5, %v315_v33  ;;  %v355_v37 = vadd.f32 %v354_v34, %v340_v32 }
 0x119   :  { %v317_v38 = vrot.slane %v316_v36, 4  ;;  %v356_v39 = vadd.f32 %v355_v37, %v341_v35 }
 0x11b   :  { %v318_v40 = vadd.f32 %v317_v38, %v316_v36  ;;  %v357_v41 = vrot.slane %v356_v39, 4 }
 0x11d   :  { %v319_v42 = vrot.slane %v318_v40, 2  ;;  %v358_v43 = vadd.f32 %v357_v41, %v356_v39 }
 0x11f   :  { %v320_v44 = vadd.f32 %v319_v42, %v318_v40  ;;  %v359_v45 = vrot.slane %v358_v43, 2 }
 0x121   :  { %v321_v46 = vrot.slane %v320_v44, 1  ;;  %v360_v47 = vadd.f32 %v359_v45, %v358_v43 }
 0x123   :  { %v322_v49 = vadd.f32 %v321_v46, %v320_v44  ;;  %v361_v50 = vrot.slane %v360_v47, 1 }
 0x125   :  { %v323_v52 = vadd.f32 %v322_v49, %v301_v48  ;;  %v362_v53 = vadd.f32 %v361_v50, %v360_v47 }
 0x127   :  { %324 = vst [vmem:[%s704_s3] sm:$0x1] %v323_v52  ;;  %v363_v54 = vadd.f32 %v362_v53, %v325_v51 }
 0x129   :  { %364 = vst [vmem:[%s705_s4] sm:$0x1] %v363_v54 }

</bundles_post_ra>
